<compile_context>
chip_gen: v6e
topology: v6e:2x2x1
jax: 0.10.0
libtpu: 0.0.40
codegen_flags: <defaults>
</compile_context>

<pallas_src>
import jax
import jax.numpy as jnp
from jax.experimental import pallas as pl
from jax.experimental.pallas import tpu as pltpu


# ---------------------------------------------------------------------------
# Pallas kernel: fused 3-layer MLP (one batch tile per grid step)
# ---------------------------------------------------------------------------
def mlp_kernel(x_ref, w1_ref, b1_ref, w2_ref, b2_ref, w3_ref, b3_ref, o_ref):
    # Layer 1: (TB, F) @ (F, H1); x cast to bf16 in-kernel, f32 accumulation.
    h1 = jnp.dot(x_ref[...].astype(jnp.bfloat16), w1_ref[...],
                 preferred_element_type=jnp.float32)
    # Fused bias + bf16 cast + ReLU: ReLU runs on packed bf16 vregs and
    # layer 2 needs bf16 operands anyway (cast(max(a,0)) == max(cast(a),0)).
    h1 = jnp.maximum((h1 + b1_ref[...]).astype(jnp.bfloat16), 0)

    # Layer 2: (TB, H1) @ (H1, 128) with lane-dense N, bias, ReLU (f32).
    h2 = jnp.dot(h1, w2_ref[...], preferred_element_type=jnp.float32)
    h2 = jnp.maximum(h2 + b2_ref[...], 0.0)

    # Layer 3 (N=1): VPU multiply + lane reduction; b3 is a scalar in SMEM.
    # Store as a lane-dense (1, TB) row (sublane->lane move goes to the XLU).
    out = jnp.sum(h2 * w3_ref[...], axis=-1) + b3_ref[0, 0]
    o_ref[...] = out.reshape(1, -1).astype(o_ref.dtype)


# ---------------------------------------------------------------------------
# Tile selection: multiple of 128, capped so the grid keeps >= 2 steps
# ---------------------------------------------------------------------------
def _pick_tile(batch, tb_max):
    tb_max = max(128, (int(tb_max) // 128) * 128)
    aligned = pl.cdiv(batch, 128) * 128
    tb = min(tb_max, aligned)
    if aligned >= 2 * 128:                      # keep >= 2 grid steps (v7x: 2 TCs)
        half = pl.cdiv(aligned // 2, 128) * 128
        tb = min(tb, half)
    return tb


# ---------------------------------------------------------------------------
# Wrapper: padding, dtype policy, BlockSpecs, grid
# ---------------------------------------------------------------------------
def mlp_baseline_forward(x, params, *, tb_max=2048):
    """x: (batch, num_inputs, num_features) or already (batch, F)."""
    w1, b1, w2, b2, w3, b3 = params
    feat, h1n = w1.shape
    h2n = w2.shape[1]

    x2d = x.reshape(-1, feat).astype(jnp.float32)   # == torch .view(-1, F)
    batch = x2d.shape[0]

    # Zero-pad hidden-2 to 128 lanes (zero weights/bias -> zero activations
    # -> zero contribution in the final dot: mathematically inert).
    h2p = max(128, pl.cdiv(h2n, 128) * 128)
    w2p = jnp.pad(w2, ((0, 0), (0, h2p - h2n)))
    b2p = jnp.pad(b2.reshape(1, -1), ((0, 0), (0, h2p - h2n)))
    w3p = jnp.pad(w3.reshape(1, -1), ((0, 0), (0, h2p - h2n))).astype(jnp.float32)

    # Batch tile (multiple of 128); pad x rows only when not tile-aligned.
    tb = _pick_tile(batch, tb_max)
    bp = pl.cdiv(batch, tb) * tb
    xp = x2d if bp == batch else jnp.pad(x2d, ((0, bp - batch), (0, 0)))

    w1b = w1.astype(jnp.bfloat16)
    w2b = w2p.astype(jnp.bfloat16)
    b1f = b1.reshape(1, -1).astype(jnp.float32)
    b2f = b2p.astype(jnp.float32)
    b3s = b3.reshape(1, 1).astype(jnp.float32)

    grid = (bp // tb,)
    resident = lambda shape: pl.BlockSpec(shape, lambda i: (0, 0))

    flops = 2 * bp * (feat * h1n + h1n * h2p + h2p)
    bytes_accessed = (bp * feat * 4 + w1b.size * 2 + w2b.size * 2
                      + b1f.size * 4 + b2f.size * 4 + w3p.size * 4
                      + b3s.size * 4 + bp * 4)

    out_row = pl.pallas_call(
        mlp_kernel,
        out_shape=jax.ShapeDtypeStruct((1, bp), jnp.float32),
        grid=grid,
        in_specs=[
            pl.BlockSpec((tb, feat), lambda i: (i, 0)),         # x tile (pipelined, f32)
            resident((feat, h1n)),                              # w1 (bf16, VMEM-resident)
            resident((1, h1n)),                                 # b1 (f32)
            resident((h1n, h2p)),                               # w2 (bf16, padded)
            resident((1, h2p)),                                 # b2 (f32, padded)
            resident((1, h2p)),                                 # w3 row (f32, padded)
            pl.BlockSpec(memory_space=pltpu.MemorySpace.SMEM),  # b3 scalar in SMEM
        ],
        out_specs=pl.BlockSpec((1, tb), lambda i: (0, i)),      # lane-dense output row
        compiler_params=pltpu.CompilerParams(
            dimension_semantics=("parallel",)),
        cost_estimate=pl.CostEstimate(
            flops=flops, transcendentals=0, bytes_accessed=bytes_accessed),
    )(xp, w1b, b1f, w2b, b2f, w3p, b3s)

    return out_row.reshape(-1, 1)[:batch]


# ---------------------------------------------------------------------------
# Deterministic parameter init (PyTorch nn.Linear-style uniform), (in, out)
# ---------------------------------------------------------------------------
def init_params(key, feature_size, h1=256, h2=64, out=1):
    def linear(key, fan_in, fan_out):
        kw, kb = jax.random.split(key)
        bound = 1.0 / jnp.sqrt(fan_in)
        w = jax.random.uniform(kw, (fan_in, fan_out), jnp.float32, -bound, bound)
        b = jax.random.uniform(kb, (1, fan_out), jnp.float32, -bound, bound)
        return w, b

    k1, k2, k3 = jax.random.split(key, 3)
    w1, b1 = linear(k1, feature_size, h1)
    w2, b2 = linear(k2, h1, h2)
    w3, b3 = linear(k3, h2, out)
    return (w1, b1, w2, b2, w3, b3)


# ---------------------------------------------------------------------------
# References
# ---------------------------------------------------------------------------
def mlp_ref_f32(x, params):
    w1, b1, w2, b2, w3, b3 = params
    x2d = x.reshape(-1, w1.shape[0])
    h1 = jnp.maximum(x2d @ w1 + b1, 0.0)
    h2 = jnp.maximum(h1 @ w2 + b2, 0.0)
    return h2 @ w3 + b3


def mlp_ref_bf16(x, params):
    # Same dtype policy as the kernel: bf16 matmul operands, f32 accumulation.
    w1, b1, w2, b2, w3, b3 = params
    x2d = x.reshape(-1, w1.shape[0])
    h1 = jnp.dot(x2d.astype(jnp.bfloat16), w1.astype(jnp.bfloat16),
                 preferred_element_type=jnp.float32)
    h1 = jnp.maximum(h1 + b1, 0.0)
    h2 = jnp.dot(h1.astype(jnp.bfloat16), w2.astype(jnp.bfloat16),
                 preferred_element_type=jnp.float32)
    h2 = jnp.maximum(h2 + b2, 0.0)
    return jnp.sum(h2 * w3.reshape(1, -1), axis=-1, keepdims=True) + b3


if __name__ == "__main__":
    # Small shapes consistent with MLP_baseline(num_inputs=8, num_features=4)
    batch, num_inputs, num_features = 2, 8, 4
    feature_size = num_inputs * num_features  # 32

    key = jax.random.PRNGKey(0)
    kx, kp = jax.random.split(key)

    x = jax.random.normal(kx, (batch, num_inputs, num_features), jnp.float32)
    params = init_params(kp, feature_size)

    out = jax.block_until_ready(mlp_baseline_forward(x, params))
    assert out.shape == (batch, 1), out.shape
    assert jnp.allclose(out, mlp_ref_bf16(x, params), atol=2e-3, rtol=2e-3)
    assert jnp.allclose(out, mlp_ref_f32(x, params), atol=5e-2, rtol=5e-2)

    # Multi-step grid with a ragged (padded) batch tail.
    batch2 = 300
    x2 = jax.random.normal(jax.random.PRNGKey(1),
                           (batch2, num_inputs, num_features), jnp.float32)
    out2 = jax.block_until_ready(mlp_baseline_forward(x2, params, tb_max=128))
    assert out2.shape == (batch2, 1), out2.shape
    assert jnp.allclose(out2, mlp_ref_bf16(x2, params), atol=2e-3, rtol=2e-3)

    # Tile-aligned batch: exercises the no-padding path and a 2-step grid.
    batch3 = 256
    x3 = jax.random.normal(jax.random.PRNGKey(2),
                           (batch3, num_inputs, num_features), jnp.float32)
    out3 = jax.block_until_ready(mlp_baseline_forward(x3, params))
    assert out3.shape == (batch3, 1), out3.shape
    assert jnp.allclose(out3, mlp_ref_bf16(x3, params), atol=2e-3, rtol=2e-3)

    print("KERNEL_OK")
</pallas_src>

<mosaic_0001>
module attributes {stable_mosaic.version = 11 : i64} {
  func.func @mlp_kernel(%arg0: i32, %arg1: memref<128x32xf32, #tpu.memory_space<vmem>>, %arg2: memref<32x256xbf16, #tpu.memory_space<vmem>>, %arg3: memref<1x256xf32, #tpu.memory_space<vmem>>, %arg4: memref<256x128xbf16, #tpu.memory_space<vmem>>, %arg5: memref<1x128xf32, #tpu.memory_space<vmem>>, %arg6: memref<1x128xf32, #tpu.memory_space<vmem>>, %arg7: memref<1x1xf32, #tpu.memory_space<smem>>, %arg8: memref<1x128xf32, #tpu.memory_space<vmem>>) attributes {dimension_semantics = [#tpu.dimension_semantics<parallel>], iteration_bounds = array<i64: 1>, scalar_prefetch = 0 : i64, scratch_operands = 0 : i64, tpu.core_type = #tpu.core_type<tc>, window_params = [{transform_indices = @transform_0, window_bounds = array<i64: 128, 32>}, {pipeline_mode = #tpu.pipeline_mode<synchronous>, transform_indices = @transform_1, window_bounds = array<i64: 32, 256>}, {pipeline_mode = #tpu.pipeline_mode<synchronous>, transform_indices = @transform_2, window_bounds = array<i64: 1, 256>}, {pipeline_mode = #tpu.pipeline_mode<synchronous>, transform_indices = @transform_3, window_bounds = array<i64: 256, 128>}, {pipeline_mode = #tpu.pipeline_mode<synchronous>, transform_indices = @transform_4, window_bounds = array<i64: 1, 128>}, {pipeline_mode = #tpu.pipeline_mode<synchronous>, transform_indices = @transform_5, window_bounds = array<i64: 1, 128>}, {transform_indices = @transform_6, window_bounds = array<i64: 1, 1>}, {transform_indices = @transform_7, window_bounds = array<i64: 1, 128>}]} {
    %c0 = arith.constant 0 : index
    %c0_0 = arith.constant 0 : index
    %0 = vector.load %arg1[%c0, %c0_0] : memref<128x32xf32, #tpu.memory_space<vmem>>, vector<128x32xf32>
    %1 = arith.truncf %0 : vector<128x32xf32> to vector<128x32xbf16>
    %c0_1 = arith.constant 0 : index
    %c0_2 = arith.constant 0 : index
    %2 = vector.load %arg2[%c0_1, %c0_2] : memref<32x256xbf16, #tpu.memory_space<vmem>>, vector<32x256xbf16>
    %cst = arith.constant dense<0.000000e+00> : vector<128x256xf32>
    %3 = tpu.matmul %1, %2, %cst {dimension_numbers = #tpu.dot_dimension_numbers<[1], [0], [0], [1], [0, 0, 1, 1], [], []>} : vector<128x32xbf16>, vector<32x256xbf16>, vector<128x256xf32> -> vector<128x256xf32>
    %c0_3 = arith.constant 0 : index
    %c0_4 = arith.constant 0 : index
    %4 = vector.load %arg3[%c0_3, %c0_4] : memref<1x256xf32, #tpu.memory_space<vmem>>, vector<1x256xf32>
    %5 = vector.broadcast %4 : vector<1x256xf32> to vector<128x256xf32>
    %6 = arith.addf %3, %5 : vector<128x256xf32>
    %7 = arith.truncf %6 : vector<128x256xf32> to vector<128x256xbf16>
    %cst_5 = arith.constant 0.000000e+00 : bf16
    %8 = vector.broadcast %cst_5 : bf16 to vector<128x256xbf16>
    %9 = arith.maximumf %7, %8 : vector<128x256xbf16>
    %c0_6 = arith.constant 0 : index
    %c0_7 = arith.constant 0 : index
    %10 = vector.load %arg4[%c0_6, %c0_7] : memref<256x128xbf16, #tpu.memory_space<vmem>>, vector<256x128xbf16>
    %cst_8 = arith.constant dense<0.000000e+00> : vector<128x128xf32>
    %11 = tpu.matmul %9, %10, %cst_8 {dimension_numbers = #tpu.dot_dimension_numbers<[1], [0], [0], [1], [0, 0, 1, 1], [], []>} : vector<128x256xbf16>, vector<256x128xbf16>, vector<128x128xf32> -> vector<128x128xf32>
    %c0_9 = arith.constant 0 : index
    %c0_10 = arith.constant 0 : index
    %12 = vector.load %arg5[%c0_9, %c0_10] : memref<1x128xf32, #tpu.memory_space<vmem>>, vector<1x128xf32>
    %13 = vector.broadcast %12 : vector<1x128xf32> to vector<128x128xf32>
    %14 = arith.addf %11, %13 : vector<128x128xf32>
    %cst_11 = arith.constant 0.000000e+00 : f32
    %15 = vector.broadcast %cst_11 : f32 to vector<128x128xf32>
    %16 = arith.maximumf %14, %15 : vector<128x128xf32>
    %c0_12 = arith.constant 0 : index
    %c0_13 = arith.constant 0 : index
    %17 = vector.load %arg6[%c0_12, %c0_13] : memref<1x128xf32, #tpu.memory_space<vmem>>, vector<1x128xf32>
    %18 = vector.broadcast %17 : vector<1x128xf32> to vector<128x128xf32>
    %19 = arith.mulf %16, %18 : vector<128x128xf32>
    %cst_14 = arith.constant dense<0.000000e+00> : vector<128xf32>
    %20 = vector.multi_reduction <add>, %19, %cst_14 [1] : vector<128x128xf32> to vector<128xf32>
    %c0_15 = arith.constant 0 : index
    %c0_16 = arith.constant 0 : index
    %21 = memref.load %arg7[%c0_15, %c0_16] : memref<1x1xf32, #tpu.memory_space<smem>>
    %22 = vector.broadcast %21 : f32 to vector<128xf32>
    %23 = arith.addf %20, %22 : vector<128xf32>
    %24 = vector.shape_cast %23 : vector<128xf32> to vector<1x128xf32>
    %c0_17 = arith.constant 0 : index
    %c0_18 = arith.constant 0 : index
    %25 = vector.load %arg8[%c0_17, %c0_18] : memref<1x128xf32, #tpu.memory_space<vmem>>, vector<1x128xf32>
    tpu.vector_store %arg8[%c0_17, %c0_18], %24 {strides = array<i32>} : memref<1x128xf32, #tpu.memory_space<vmem>>, vector<1x128xf32>,
    return
  }
  func.func @transform_0(%arg0: i32) -> (i32, i32) {
    %c0_i32 = arith.constant 0 : i32
    %c0_i32_0 = arith.constant 0 : i32
    return %arg0, %c0_i32 : i32, i32
  }
  func.func @transform_1(%arg0: i32) -> (i32, i32) {
    %c0_i32 = arith.constant 0 : i32
    %c0_i32_0 = arith.constant 0 : i32
    %c0_i32_1 = arith.constant 0 : i32
    return %c0_i32, %c0_i32_0 : i32, i32
  }
  func.func @transform_2(%arg0: i32) -> (i32, i32) {
    %c0_i32 = arith.constant 0 : i32
    %c0_i32_0 = arith.constant 0 : i32
    %c0_i32_1 = arith.constant 0 : i32
    return %c0_i32, %c0_i32_0 : i32, i32
  }
  func.func @transform_3(%arg0: i32) -> (i32, i32) {
    %c0_i32 = arith.constant 0 : i32
    %c0_i32_0 = arith.constant 0 : i32
    %c0_i32_1 = arith.constant 0 : i32
    return %c0_i32, %c0_i32_0 : i32, i32
  }
  func.func @transform_4(%arg0: i32) -> (i32, i32) {
    %c0_i32 = arith.constant 0 : i32
    %c0_i32_0 = arith.constant 0 : i32
    %c0_i32_1 = arith.constant 0 : i32
    return %c0_i32, %c0_i32_0 : i32, i32
  }
  func.func @transform_5(%arg0: i32) -> (i32, i32) {
    %c0_i32 = arith.constant 0 : i32
    %c0_i32_0 = arith.constant 0 : i32
    %c0_i32_1 = arith.constant 0 : i32
    return %c0_i32, %c0_i32_0 : i32, i32
  }
  func.func @transform_6(%arg0: i32) -> (i32, i32) {
    %c0_i32 = arith.constant 0 : i32
    %c0_i32_0 = arith.constant 0 : i32
    %c0_i32_1 = arith.constant 0 : i32
    return %c0_i32, %c0_i32_0 : i32, i32
  }
  func.func @transform_7(%arg0: i32) -> (i32, i32) {
    %c0_i32 = arith.constant 0 : i32
    %c0_i32_0 = arith.constant 0 : i32
    return %c0_i32, %arg0 : i32, i32
  }
}

</mosaic_0001>

<bundles_post_ra>
// kernel: tpu_custom_call.1
= control target key start
LH: loop header
LB: loop body
LE: loop exit
PB: predicated region body
PF: predicated region fallthrough
CT: control target
= control target key end

     0   :  { %v879_v2 = vmov 0   ;;  %vm89_vm0 = vcmask 261120   ;;  %s1214_s0 = inlined_call_operand.vmem [shape: f32[128,32], index: 0, kind: input, shape index: {}]   ;;  %s1215_s1 = inlined_call_operand.vmem [shape: bf16[32,256], index: 1, kind: input, shape index: {}]   ;;  %s1216_s2 = inlined_call_operand.vmem [shape: f32[1,256], index: 2, kind: input, shape index: {}]   ;;  %s1217_s3 = inlined_call_operand.vmem [shape: bf16[256,128], index: 3, kind: input, shape index: {}]   ;;  %s1218_s4 = inlined_call_operand.vmem [shape: f32[1,128], index: 4, kind: input, shape index: {}]   ;;  %s1219_s5 = inlined_call_operand.vmem [shape: f32[1,128], index: 5, kind: input, shape index: {}]   ;;  %s1220_s6 = inlined_call_operand.<no memory space> [shape: f32[1,1], index: 6, kind: input, shape index: {}]   ;;  %s1221_s7 = inlined_call_operand.hbm [shape: f32[1,128], index: 7, kind: output, shape index: {}]  }
   0x1   :  { %v835_v0 = vld [vmem:[%s1215_s1 + $0x14] ss:$8 sps:$4 sm:$0xff]   ;;  %v837_v1 = vld [vmem:[%s1215_s1 + $0x10] ss:$8 sps:$4 sm:$0xff]   ;;  %146 = vmatprep.mubr.bf16.mxu0 %v879_v2  ;;  %v838_v3 = vld [vmem:[%s1215_s1 + $0x4] ss:$8 sps:$4 sm:$0xff]  }
   0x2   :  { %126 = vmatprep.subr.bf16.mxu0 %v835_v0  ;;  %v840_v4 = vld [vmem:[%s1215_s1] ss:$8 sps:$4 sm:$0xff]   ;;  %v841_v8 = vld [vmem:[%s1217_s3 + $0x78] sm:$0xff]   ;;  %v31_v9 = vld [vmem:[%s1214_s0 + $0x10] sm:$0xff] }
   0x3   :  { %127 = vmatpush1.bf16.msra.mxu0 %v837_v1  ;;  %v29_v5 = vld [vmem:[%s1214_s0] sm:$0xff]  ;;  %v30_v6 = vld [vmem:[%s1214_s0 + $0x8] sm:$0xff]  ;;  %v32_v10 = vld [vmem:[%s1214_s0 + $0x18] sm:$0xff]  ;;  %817 = vmatprep.subr.bf16.mxu1 %v841_v8 }
   0x4   :  { %128 = vmatprep.subr.bf16.mxu0 %v838_v3  ;;  %v45_v7 = vpack.c.bf16 %v30_v6, %v29_v5  ;;  %v842_v11 = vld [vmem:[%s1217_s3 + $0x38] sm:$0xff]   ;;  %v843_v12 = vld [vmem:[%s1217_s3 + $0x70] sm:$0xff]   ;;  %v845_v14 = vld [vmem:[%s1217_s3 + $0x68] sm:$0xff]   ;;  %v46_v15 = vpack.c.bf16 %v32_v10, %v31_v9 }
   0x5   :  { %v844_v13 = vld [vmem:[%s1217_s3 + $0x30] sm:$0xff]   ;;  %825 = vmatpush3.bf16.msra.mxu1 %v842_v11  ;;  %v846_v16 = vld [vmem:[%s1217_s3 + $0x28] sm:$0xff]   ;;  %v847_v17 = vld [vmem:[%s1217_s3 + $0x60] sm:$0xff]  }
   0x6   :  { %818 = vmatprep.subr.bf16.mxu1 %v843_v12  ;;  %v33_v18 = vld [vmem:[%s1214_s0 + $0x20] sm:$0xff]  ;;  %v34_v19 = vld [vmem:[%s1214_s0 + $0x28] sm:$0xff]  ;;  %v849_v21 = vld [vmem:[%s1217_s3 + $0x58] sm:$0xff]  }
   0x7   :  { %129 = vmatpush1.bf16.msra.mxu0 %v840_v4  ;;  %v848_v20 = vld [vmem:[%s1217_s3 + $0x20] sm:$0xff]   ;;  %v47_v22 = vpack.c.bf16 %v34_v19, %v33_v18 }
   0x8   :  { %753 = vmatprep.subr.bf16.mxu0 %v841_v8 }
   0x9   :  { %826 = vmatpush3.bf16.msra.mxu1 %v844_v13 }
   0xa   :  { %727 = vmatmul.mubr.msk.bf16.vlgmr.msra.gmra.mxu0 %vm89_vm0, %v45_v7  ;;  %819 = vmatprep.subr.bf16.mxu1 %v845_v14 }
   0xb   :  { %156 = vmatprep.mubr.bf16.mxu0 %v879_v2  ;;  %754 = vmatpush3.bf16.msra.mxu0 %v842_v11 }
   0xc   :  { %755 = vmatprep.subr.bf16.mxu0 %v843_v12 }
   0xd   :  { %827 = vmatpush3.bf16.msra.mxu1 %v846_v16 }
   0xe   :  { %820 = vmatprep.subr.bf16.mxu1 %v847_v17 }
   0xf   :  { %756 = vmatpush3.bf16.msra.mxu0 %v844_v13 }
  0x10   :  { %757 = vmatprep.subr.bf16.mxu0 %v845_v14 }
  0x12   :  { %728 = vmatmul.mubr.msk.bf16.gmra.mxu0 %vm89_vm0, %v46_v15 }
  0x13   :  { %166 = vmatprep.mubr.bf16.mxu0 %v879_v2  ;;  %758 = vmatpush3.bf16.msra.mxu0 %v846_v16 }
  0x14   :  { %759 = vmatprep.subr.bf16.mxu0 %v847_v17 }
  0x15   :  { %13 = vsyncpa [#allocation4], 0  ;;  %v850_v23 = vld [vmem:[%s1217_s3 + $0x18] sm:$0xff]   ;;  %828 = vmatpush3.bf16.msra.mxu1 %v848_v20  ;;  %v35_v24 = vld [vmem:[%s1214_s0 + $0x30] sm:$0xff]  ;;  %v59_v45 = vlaneseq  ;;  %vm607_vm1 = vcmask 130112   ;;  %vm614_vm2 = vcmask 195712  }
  0x16   :  { %821 = vmatprep.subr.bf16.mxu1 %v849_v21  ;;  %v36_v25 = vld [vmem:[%s1214_s0 + $0x38] sm:$0xff]  ;;  %v37_v27 = vld [vmem:[%s1214_s0 + $0x40] sm:$0xff]  ;;  %v38_v28 = vld [vmem:[%s1214_s0 + $0x48] sm:$0xff]  ;;  %vm621_vm3 = vcmask 261312   ;;  %vm628_vm4 = vcmask 326912   ;;  %vm635_vm5 = vcmask 392512  }
  0x17   :  { %760 = vmatpush3.bf16.msra.mxu0 %v848_v20  ;;  %v48_v26 = vpack.c.bf16 %v36_v25, %v35_v24  ;;  %v49_v29 = vpack.c.bf16 %v38_v28, %v37_v27  ;;  %v39_v30 = vld [vmem:[%s1214_s0 + $0x50] sm:$0xff]  ;;  %v40_v31 = vld [vmem:[%s1214_s0 + $0x58] sm:$0xff]  ;;  %v41_v33 = vld [vmem:[%s1214_s0 + $0x60] sm:$0xff]  ;;  %v1046_v46 = vshrl.u32 %v59_v45, 7  ;;  %vm642_vm6 = vcmask 458112  }
  0x18   :  { %761 = vmatprep.subr.bf16.mxu0 %v849_v21  ;;  %v50_v32 = vpack.c.bf16 %v40_v31, %v39_v30  ;;  %v42_v34 = vld [vmem:[%s1214_s0 + $0x68] sm:$0xff]  ;;  %v43_v36 = vld [vmem:[%s1214_s0 + $0x70] sm:$0xff]  ;;  %v44_v37 = vld [vmem:[%s1214_s0 + $0x78] sm:$0xff]  ;;  %vm649_vm7 = vcmask 523712   ;;  %vm656_vm8 = vcmask 589312   ;;  %vm663_vm9 = vcmask 654912  }
  0x19   :  { %829 = vmatpush3.bf16.msra.mxu1 %v850_v23  ;;  %v51_v35 = vpack.c.bf16 %v42_v34, %v41_v33  ;;  %v52_v38 = vpack.c.bf16 %v44_v37, %v43_v36  ;;  %v851_v39 = vld [vmem:[%s1217_s3 + $0x50] sm:$0xff]   ;;  %v853_v41 = vld [vmem:[%s1217_s3 + $0x48] sm:$0xff]   ;;  %v855_v43 = vld [vmem:[%s1217_s3 + $0x40] sm:$0xff]   ;;  %v61_v47 = vsub.s32 0, %v1046_v46  ;;  %v65_v49 = vsub.s32 1, %v1046_v46 }
  0x1a   :  { %729 = vmatmul.mubr.msk.bf16.gmra.mxu0 %vm89_vm0, %v47_v22  ;;  %v852_v40 = vld [vmem:[%s1217_s3 + $0x10] sm:$0xff]   ;;  %822 = vmatprep.subr.bf16.mxu1 %v851_v39  ;;  %v854_v42 = vld [vmem:[%s1217_s3 + $0x8] sm:$0xff]   ;;  %v856_v44 = vld [vmem:[%s1217_s3] sm:$0xff]   ;;  %vm670_vm10 = vcmask 720512   ;;  %vm677_vm11 = vcmask 786112   ;;  %vm684_vm12 = vcmask 851712  }
  0x1b   :  { %176 = vmatprep.mubr.bf16.mxu0 %v879_v2  ;;  %762 = vmatpush3.bf16.msra.mxu0 %v850_v23  ;;  %v57_v48 = vld [vmem:[%s1216_s2] sm:$0x3]  ;;  %vm691_vm13 = vcmask 917312   ;;  %vm698_vm14 = vcmask 982912   ;;  %vm705_vm15 = vcmask 1048512  }
  0x1c   :  { %763 = vmatprep.subr.bf16.mxu0 %v851_v39  ;;  %v1053_v51 = vrot.slane %v57_v48, %v61_v47  ;;  %v1055_v53 = vrot.slane %v57_v48, %v65_v49 }
  0x1d   :  { %830 = vmatpush3.bf16.msra.mxu1 %v852_v40 }
  0x1e   :  { %823 = vmatprep.subr.bf16.mxu1 %v853_v41 }
  0x1f   :  { %764 = vmatpush3.bf16.msra.mxu0 %v852_v40 }
  0x20   :  { %765 = vmatprep.subr.bf16.mxu0 %v853_v41 }
  0x21   :  { %831 = vmatpush3.bf16.msra.mxu1 %v854_v42 }
  0x22   :  { %730 = vmatmul.mubr.msk.bf16.gmra.mxu0 %vm89_vm0, %v48_v26  ;;  %824 = vmatprep.subr.bf16.mxu1 %v855_v43 }
  0x23   :  { %186 = vmatprep.mubr.bf16.mxu0 %v879_v2  ;;  %766 = vmatpush3.bf16.msra.mxu0 %v854_v42 }
  0x24   :  { %767 = vmatprep.subr.bf16.mxu0 %v855_v43 }
  0x25   :  { %832 = vmatpush3.bf16.msra.mxu1 %v856_v44 }
  0x27   :  { %768 = vmatpush3.bf16.msra.mxu0 %v856_v44 }
  0x2a   :  { %731 = vmatmul.mubr.msk.bf16.gmra.mxu0 %vm89_vm0, %v49_v29 }
  0x2b   :  { %196 = vmatprep.mubr.bf16.mxu0 %v879_v2 }
  0x32   :  { %732 = vmatmul.mubr.msk.bf16.gmra.mxu0 %vm89_vm0, %v50_v32 }
  0x33   :  { %206 = vmatprep.mubr.bf16.mxu0 %v879_v2 }
  0x3a   :  { %733 = vmatmul.mubr.msk.bf16.gmra.mxu0 %vm89_vm0, %v51_v35 }
  0x3b   :  { %216 = vmatprep.mubr.bf16.mxu0 %v879_v2 }
  0x42   :  { %734 = vmatmul.mubr.msk.bf16.gmra.mxu0 %vm89_vm0, %v52_v38 }
  0xca   :  { %v148_v50 = vpop.f32.mrf.mxu0 }
  0xcb   :  { %v149_v56 = vadd.f32 %v148_v50, %v1053_v51 }
  0xcc   :  { %v150_v52 = vpop.f32.mrf.mxu0 }
  0xcd   :  { %v151_v58 = vadd.f32 %v150_v52, %v1055_v53 }
  0xce   :  { %v152_v54 = vpop.f32.mrf.mxu0 }
  0xcf   :  { %v153_v55 = vadd.f32 %v152_v54, %v1053_v51 }
  0xd0   :  { %v154_v57 = vpop.f32.mrf.mxu0 }
  0xd1   :  { %v155_v59 = vadd.f32 %v154_v57, %v1055_v53  ;;  %v227_v60 = vpack.c.bf16 %v153_v55, %v149_v56 }
  0xd2   :  { %v158_v61 = vpop.f32.mrf.mxu0 }
  0xd3   :  { %v228_v62 = vpack.c.bf16 %v155_v59, %v151_v58  ;;  %v243_v1 = vmax.bf16 %v879_v2, %v227_v60  ;;  %v159_v5 = vadd.f32 %v158_v61, %v1053_v51 }
  0xd4   :  { %v160_v63 = vpop.f32.mrf.mxu0 }
  0xd5   :  { %v244_v0 = vmax.bf16 %v879_v2, %v228_v62  ;;  %v161_v7 = vadd.f32 %v160_v63, %v1055_v53 }
  0xd6   :  { %v162_v3 = vpop.f32.mrf.mxu0 }
  0xd7   :  { %v163_v4 = vadd.f32 %v162_v3, %v1053_v51  ;;  %426 = vmatprep.mubr.bf16.mxu0 %v244_v0 }
  0xd8   :  { %v164_v6 = vpop.f32.mrf.mxu0  ;;  %427 = vmatmul.mubr.bf16.vlgmr.msra.gmra.mxu0 %v243_v1 }
  0xd9   :  { %v165_v8 = vadd.f32 %v164_v6, %v1055_v53  ;;  %v229_v9 = vpack.c.bf16 %v163_v4, %v159_v5 }
  0xda   :  { %v168_v10 = vpop.f32.mrf.mxu0 }
  0xdb   :  { %v230_v11 = vpack.c.bf16 %v165_v8, %v161_v7  ;;  %v245_v15 = vmax.bf16 %v879_v2, %v229_v9  ;;  %v169_v17 = vadd.f32 %v168_v10, %v1053_v51 }
  0xdc   :  { %v170_v12 = vpop.f32.mrf.mxu0 }
  0xdd   :  { %v246_v13 = vmax.bf16 %v879_v2, %v230_v11  ;;  %v171_v19 = vadd.f32 %v170_v12, %v1055_v53 }
  0xde   :  { %v172_v14 = vpop.f32.mrf.mxu0 }
  0xdf   :  { %v173_v16 = vadd.f32 %v172_v14, %v1053_v51  ;;  %434 = vmatprep.mubr.bf16.mxu1 %v246_v13 }
  0xe0   :  { %v174_v18 = vpop.f32.mrf.mxu0  ;;  %435 = vmatmul.mubr.bf16.vlgmr.msra.gmra.mxu1 %v245_v15 }
  0xe1   :  { %v175_v20 = vadd.f32 %v174_v18, %v1055_v53  ;;  %v231_v21 = vpack.c.bf16 %v173_v16, %v169_v17 }
  0xe2   :  { %v178_v22 = vpop.f32.mrf.mxu0 }
  0xe3   :  { %v232_v23 = vpack.c.bf16 %v175_v20, %v171_v19  ;;  %v247_v27 = vmax.bf16 %v879_v2, %v231_v21  ;;  %v179_v29 = vadd.f32 %v178_v22, %v1053_v51 }
  0xe4   :  { %v180_v24 = vpop.f32.mrf.mxu0 }
  0xe5   :  { %v248_v25 = vmax.bf16 %v879_v2, %v232_v23  ;;  %v181_v31 = vadd.f32 %v180_v24, %v1055_v53 }
  0xe6   :  { %v182_v26 = vpop.f32.mrf.mxu0 }
  0xe7   :  { %v183_v28 = vadd.f32 %v182_v26, %v1053_v51  ;;  %442 = vmatprep.mubr.bf16.mxu1 %v248_v25 }
  0xe8   :  { %v184_v30 = vpop.f32.mrf.mxu0  ;;  %443 = vmatmul.mubr.bf16.gmra.mxu1 %v247_v27 }
  0xe9   :  { %v185_v32 = vadd.f32 %v184_v30, %v1055_v53  ;;  %v233_v33 = vpack.c.bf16 %v183_v28, %v179_v29 }
  0xea   :  { %v188_v34 = vpop.f32.mrf.mxu0 }
  0xeb   :  { %v234_v35 = vpack.c.bf16 %v185_v32, %v181_v31  ;;  %v249_v39 = vmax.bf16 %v879_v2, %v233_v33  ;;  %v189_v41 = vadd.f32 %v188_v34, %v1053_v51  ;;  %v1114_v31 = vld [vmem:[%s1219_s5] ss:$0 sm:$0xff] }
  0xec   :  { %v190_v36 = vpop.f32.mrf.mxu0 }
  0xed   :  { %v250_v37 = vmax.bf16 %v879_v2, %v234_v35  ;;  %v191_v43 = vadd.f32 %v190_v36, %v1055_v53 }
  0xee   :  { %v192_v38 = vpop.f32.mrf.mxu0 }
  0xef   :  { %v193_v40 = vadd.f32 %v192_v38, %v1053_v51  ;;  %450 = vmatprep.mubr.bf16.mxu1 %v250_v37 }
  0xf0   :  { %v194_v42 = vpop.f32.mrf.mxu0  ;;  %451 = vmatmul.mubr.bf16.gmra.mxu1 %v249_v39 }
  0xf1   :  { %v195_v44 = vadd.f32 %v194_v42, %v1055_v53  ;;  %v235_v47 = vpack.c.bf16 %v193_v40, %v189_v41 }
  0xf2   :  { %v198_v48 = vpop.f32.mrf.mxu0 }
  0xf3   :  { %v236_v49 = vpack.c.bf16 %v195_v44, %v191_v43  ;;  %v251_v55 = vmax.bf16 %v879_v2, %v235_v47  ;;  %v199_v57 = vadd.f32 %v198_v48, %v1053_v51 }
  0xf4   :  { %v200_v50 = vpop.f32.mrf.mxu0 }
  0xf5   :  { %v252_v52 = vmax.bf16 %v879_v2, %v236_v49  ;;  %v201_v59 = vadd.f32 %v200_v50, %v1055_v53 }
  0xf6   :  { %v202_v54 = vpop.f32.mrf.mxu0 }
  0xf7   :  { %v203_v56 = vadd.f32 %v202_v54, %v1053_v51  ;;  %458 = vmatprep.mubr.bf16.mxu1 %v252_v52 }
  0xf8   :  { %v204_v58 = vpop.f32.mrf.mxu0  ;;  %459 = vmatmul.mubr.bf16.gmra.mxu1 %v251_v55 }
  0xf9   :  { %v205_v60 = vadd.f32 %v204_v58, %v1055_v53  ;;  %v237_v61 = vpack.c.bf16 %v203_v56, %v199_v57 }
  0xfa   :  { %v208_v62 = vpop.f32.mrf.mxu0 }
  0xfb   :  { %v238_v63 = vpack.c.bf16 %v205_v60, %v201_v59  ;;  %v253_v4 = vmax.bf16 %v879_v2, %v237_v61  ;;  %v209_v6 = vadd.f32 %v208_v62, %v1053_v51 }
  0xfc   :  { %v210_v0 = vpop.f32.mrf.mxu0 }
  0xfd   :  { %v254_v1 = vmax.bf16 %v879_v2, %v238_v63  ;;  %v211_v8 = vadd.f32 %v210_v0, %v1055_v53 }
  0xfe   :  { %v212_v3 = vpop.f32.mrf.mxu0 }
  0xff   :  { %v213_v5 = vadd.f32 %v212_v3, %v1053_v51  ;;  %466 = vmatprep.mubr.bf16.mxu1 %v254_v1 }
 0x100   :  { %v214_v7 = vpop.f32.mrf.mxu0  ;;  %467 = vmatmul.mubr.bf16.gmra.mxu1 %v253_v4 }
 0x101   :  { %v215_v9 = vadd.f32 %v214_v7, %v1055_v53  ;;  %v239_v10 = vpack.c.bf16 %v213_v5, %v209_v6 }
 0x102   :  { %v218_v11 = vpop.f32.mrf.mxu0 }
 0x103   :  { %v240_v12 = vpack.c.bf16 %v215_v9, %v211_v8  ;;  %v255_v16 = vmax.bf16 %v879_v2, %v239_v10  ;;  %v219_v18 = vadd.f32 %v218_v11, %v1053_v51 }
 0x104   :  { %v220_v13 = vpop.f32.mrf.mxu0 }
 0x105   :  { %v256_v14 = vmax.bf16 %v879_v2, %v240_v12  ;;  %v221_v20 = vadd.f32 %v220_v13, %v1055_v53 }
 0x106   :  { %v222_v15 = vpop.f32.mrf.mxu0 }
 0x107   :  { %v223_v17 = vadd.f32 %v222_v15, %v1053_v51  ;;  %474 = vmatprep.mubr.bf16.mxu1 %v256_v14  ;;  %v1108_v51 = vld [vmem:[%s1218_s4] ss:$0 sm:$0xff] }
 0x108   :  { %v224_v19 = vpop.f32.mrf.mxu0  ;;  %475 = vmatmul.mubr.bf16.gmra.mxu1 %v255_v16 }
 0x109   :  { %v225_v21 = vadd.f32 %v224_v19, %v1055_v53  ;;  %v241_v22 = vpack.c.bf16 %v223_v17, %v219_v18 }
 0x10b   :  { %v242_v23 = vpack.c.bf16 %v225_v21, %v221_v20  ;;  %v257_v25 = vmax.bf16 %v879_v2, %v241_v22 }
 0x10d   :  { %v258_v24 = vmax.bf16 %v879_v2, %v242_v23 }
 0x10f   :  { %482 = vmatprep.mubr.bf16.mxu1 %v258_v24 }
 0x110   :  { %483 = vmatmul.mubr.bf16.gmra.mxu1 %v257_v25 }
 0x198   :  { %v769_v26 = vpop.f32.mrf.mxu0 }
 0x19a   :  { %v770_v27 = vpop.f32.mrf.mxu0 }
 0x19b   :  { %v771_v28 = vadd.f32 %v770_v27, %v769_v26 }
 0x19c   :  { %v772_v29 = vpop.f32.mrf.mxu0 }
 0x19d   :  { %v429_v30 = vadd.f32 %v771_v28, %v1108_v51 }
 0x19e   :  { %v773_v53 = vpop.f32.mrf.mxu0 }
 0x19f   :  { %v774_v2 = vadd.f32 %v773_v53, %v772_v29  ;;  %v491_v32 = vmax.f32 %v429_v30, 0.0 }
 0x1a0   :  { %v775_v33 = vpop.f32.mrf.mxu1 }
 0x1a1   :  { %v432_v34 = vadd.f32 %v774_v2, %v1108_v51  ;;  %v514_v35 = vmul.f32 %v1114_v31, %v491_v32 }
 0x1a2   :  { %v776_v36 = vpop.f32.mrf.mxu1 }
 0x1a3   :  { %v492_v37 = vmax.f32 %v432_v34, 0.0  ;;  %v777_v38 = vadd.f32 %v776_v36, %v775_v33  ;;  %530 = vadd.xlane.f32.xlu0 %v514_v35 }
 0x1a4   :  { %v778_v39 = vpop.f32.mrf.mxu1 }
 0x1a5   :  { %v515_v40 = vmul.f32 %v1114_v31, %v492_v37  ;;  %v437_v41 = vadd.f32 %v777_v38, %v1108_v51 }
 0x1a6   :  { %v779_v42 = vpop.f32.mrf.mxu1 }
 0x1a7   :  { %v780_v43 = vadd.f32 %v779_v42, %v778_v39  ;;  %532 = vadd.xlane.f32.xlu0 %v515_v40  ;;  %v493_v44 = vmax.f32 %v437_v41, 0.0 }
 0x1a8   :  { %v781_v47 = vpop.f32.mrf.mxu1 }
 0x1a9   :  { %v440_v48 = vadd.f32 %v780_v43, %v1108_v51  ;;  %v516_v49 = vmul.f32 %v1114_v31, %v493_v44 }
 0x1aa   :  { %v782_v50 = vpop.f32.mrf.mxu1 }
 0x1ab   :  { %v494_v52 = vmax.f32 %v440_v48, 0.0  ;;  %v783_v54 = vadd.f32 %v782_v50, %v781_v47  ;;  %534 = vadd.xlane.f32.xlu1 %v516_v49 }
 0x1ac   :  { %v784_v55 = vpop.f32.mrf.mxu1 }
 0x1ad   :  { %v445_v56 = vadd.f32 %v783_v54, %v1108_v51  ;;  %v517_v57 = vmul.f32 %v1114_v31, %v494_v52 }
 0x1ae   :  { %v785_v58 = vpop.f32.mrf.mxu1 }
 0x1af   :  { %v495_v59 = vmax.f32 %v445_v56, 0.0  ;;  %v786_v60 = vadd.f32 %v785_v58, %v784_v55  ;;  %536 = vadd.xlane.f32.xlu1 %v517_v57 }
 0x1b0   :  { %v787_v61 = vpop.f32.mrf.mxu1 }
 0x1b1   :  { %v448_v62 = vadd.f32 %v786_v60, %v1108_v51  ;;  %v518_v63 = vmul.f32 %v1114_v31, %v495_v59 }
 0x1b2   :  { %v788_v0 = vpop.f32.mrf.mxu1 }
 0x1b3   :  { %v496_v1 = vmax.f32 %v448_v62, 0.0  ;;  %v789_v3 = vadd.f32 %v788_v0, %v787_v61  ;;  %538 = vadd.xlane.f32.xlu0 %v518_v63 }
 0x1b4   :  { %v790_v4 = vpop.f32.mrf.mxu1 }
 0x1b5   :  { %v453_v5 = vadd.f32 %v789_v3, %v1108_v51  ;;  %v519_v6 = vmul.f32 %v1114_v31, %v496_v1 }
 0x1b6   :  { %v791_v7 = vpop.f32.mrf.mxu1 }
 0x1b7   :  { %v497_v8 = vmax.f32 %v453_v5, 0.0  ;;  %v792_v9 = vadd.f32 %v791_v7, %v790_v4  ;;  %540 = vadd.xlane.f32.xlu1 %v519_v6  ;;  %v1148_v6 = vand.u32 127, %v59_v45 }
 0x1b8   :  { %v793_v10 = vpop.f32.mrf.mxu1 }
 0x1b9   :  { %v456_v11 = vadd.f32 %v792_v9, %v1108_v51  ;;  %v520_v12 = vmul.f32 %v1114_v31, %v497_v8  ;;  %v602_v9 = vadd.s32 4294967288, %v1148_v6  ;;  %v600_v45 = vsub.s32 %v1148_v6, %v1046_v46 }
 0x1ba   :  { %v794_v13 = vpop.f32.mrf.mxu1 }
 0x1bb   :  { %v498_v14 = vmax.f32 %v456_v11, 0.0  ;;  %v795_v15 = vadd.f32 %v794_v13, %v793_v10  ;;  %542 = vadd.xlane.f32.xlu0 %v520_v12  ;;  %v616_v10 = vadd.s32 4294967272, %v1148_v6  ;;  %v623_v11 = vadd.s32 4294967264, %v1148_v6 }
 0x1bc   :  { %v796_v16 = vpop.f32.mrf.mxu1  ;;  %v630_v13 = vadd.s32 4294967256, %v1148_v6 }
 0x1bd   :  { %v461_v17 = vadd.f32 %v795_v15, %v1108_v51  ;;  %v521_v18 = vmul.f32 %v1114_v31, %v498_v14  ;;  %v605_v15 = vsub.s32 %v602_v9, %v1046_v46 }
 0x1be   :  { %v797_v19 = vpop.f32.mrf.mxu1 }
 0x1bf   :  { %v499_v20 = vmax.f32 %v461_v17, 0.0  ;;  %v798_v21 = vadd.f32 %v797_v19, %v796_v16  ;;  %544 = vadd.xlane.f32.xlu1 %v521_v18  ;;  %v637_v17 = vadd.s32 4294967248, %v1148_v6  ;;  %v619_v18 = vsub.s32 %v616_v10, %v1046_v46 }
 0x1c0   :  { %v799_v22 = vpop.f32.mrf.mxu1  ;;  %v644_v19 = vadd.s32 4294967240, %v1148_v6 }
 0x1c1   :  { %v464_v23 = vadd.f32 %v798_v21, %v1108_v51  ;;  %v522_v24 = vmul.f32 %v1114_v31, %v499_v20  ;;  %v626_v21 = vsub.s32 %v623_v11, %v1046_v46 }
 0x1c2   :  { %v800_v25 = vpop.f32.mrf.mxu1 }
 0x1c3   :  { %v500_v26 = vmax.f32 %v464_v23, 0.0  ;;  %v801_v27 = vadd.f32 %v800_v25, %v799_v22  ;;  %546 = vadd.xlane.f32.xlu0 %v522_v24  ;;  %v651_v22 = vadd.s32 4294967232, %v1148_v6  ;;  %v633_v25 = vsub.s32 %v630_v13, %v1046_v46 }
 0x1c4   :  { %v802_v28 = vpop.f32.mrf.mxu1 }
 0x1c5   :  { %v469_v29 = vadd.f32 %v801_v27, %v1108_v51  ;;  %v523_v30 = vmul.f32 %v1114_v31, %v500_v26  ;;  %v658_v26 = vadd.s32 4294967224, %v1148_v6 }
 0x1c6   :  { %v803_v53 = vpop.f32.mrf.mxu1 }
 0x1c7   :  { %v501_v2 = vmax.f32 %v469_v29, 0.0  ;;  %v804_v32 = vadd.f32 %v803_v53, %v802_v28  ;;  %548 = vadd.xlane.f32.xlu1 %v523_v30  ;;  %v640_v30 = vsub.s32 %v637_v17, %v1046_v46 }
 0x1c8   :  { %v805_v33 = vpop.f32.mrf.mxu1 }
 0x1c9   :  { %v472_v34 = vadd.f32 %v804_v32, %v1108_v51  ;;  %v524_v35 = vmul.f32 %v1114_v31, %v501_v2  ;;  %v647_v2 = vsub.s32 %v644_v19, %v1046_v46  ;;  %v665_v32 = vadd.s32 4294967216, %v1148_v6 }
 0x1ca   :  { %v806_v36 = vpop.f32.mrf.mxu1 }
 0x1cb   :  { %v502_v37 = vmax.f32 %v472_v34, 0.0  ;;  %v807_v38 = vadd.f32 %v806_v36, %v805_v33  ;;  %550 = vadd.xlane.f32.xlu0 %v524_v35  ;;  %v654_v35 = vsub.s32 %v651_v22, %v1046_v46 }
 0x1cc   :  { %v808_v39 = vpop.f32.mrf.mxu1 }
 0x1cd   :  { %v477_v40 = vadd.f32 %v807_v38, %v1108_v51  ;;  %v525_v41 = vmul.f32 %v1114_v31, %v502_v37  ;;  %v672_v37 = vadd.s32 4294967208, %v1148_v6 }
 0x1ce   :  { %v809_v42 = vpop.f32.mrf.mxu1 }
 0x1cf   :  { %v503_v43 = vmax.f32 %v477_v40, 0.0  ;;  %v810_v44 = vadd.f32 %v809_v42, %v808_v39  ;;  %552 = vadd.xlane.f32.xlu1 %v525_v41  ;;  %v661_v40 = vsub.s32 %v658_v26, %v1046_v46 }
 0x1d0   :  { %v811_v47 = vpop.f32.mrf.mxu1 }
 0x1d1   :  { %v480_v48 = vadd.f32 %v810_v44, %v1108_v51  ;;  %v526_v49 = vmul.f32 %v1114_v31, %v503_v43 }
 0x1d2   :  { %v812_v50 = vpop.f32.mrf.mxu1 }
 0x1d3   :  { %v504_v52 = vmax.f32 %v480_v48, 0.0  ;;  %v813_v54 = vadd.f32 %v812_v50, %v811_v47  ;;  %554 = vadd.xlane.f32.xlu0 %v526_v49  ;;  %v679_v47 = vadd.s32 4294967200, %v1148_v6  ;;  %v668_v50 = vsub.s32 %v665_v32, %v1046_v46 }
 0x1d4   :  { %v814_v55 = vpop.f32.mrf.mxu1 }
 0x1d5   :  { %v485_v56 = vadd.f32 %v813_v54, %v1108_v51  ;;  %v527_v57 = vmul.f32 %v1114_v31, %v504_v52  ;;  %v686_v52 = vadd.s32 4294967192, %v1148_v6 }
 0x1d6   :  { %v815_v58 = vpop.f32.mrf.mxu1 }
 0x1d7   :  { %v505_v59 = vmax.f32 %v485_v56, 0.0  ;;  %v816_v60 = vadd.f32 %v815_v58, %v814_v55  ;;  %556 = vadd.xlane.f32.xlu1 %v527_v57  ;;  %v675_v57 = vsub.s32 %v672_v37, %v1046_v46  ;;  %v689_v9 = vsub.s32 %v686_v52, %v1046_v46 }
 0x1d9   :  { %v488_v61 = vadd.f32 %v816_v60, %v1108_v51  ;;  %v528_v62 = vmul.f32 %v1114_v31, %v505_v59  ;;  %v609_v51 = vadd.s32 4294967280, %v1148_v6 }
 0x1db   :  { %v506_v63 = vmax.f32 %v488_v61, 0.0  ;;  %558 = vadd.xlane.f32.xlu0 %v528_v62  ;;  %v612_v16 = vsub.s32 %v609_v51, %v1046_v46 }
 0x1dd   :  { %v529_v0 = vmul.f32 %v1114_v31, %v506_v63  ;;  %v1157_v31 = vstv %s1220_s6  ;;  %v693_v63 = vadd.s32 4294967184, %v1148_v6  ;;  %s880_s6 = smov [#allocation3]  }
 0x1de   :  { %s715_s27 = sshll.u32 %s880_s6, 4  ;;  %s716_s27 = int_to_ptr.vmem [resolvable:$true] %s715_s27 }
 0x1df   :  { %560 = vadd.xlane.f32.xlu1 %v529_v0  ;;  %s857_s28 = scalar_lea.vmem %s716_s27, 16  ;;  %s861_s29 = scalar_lea.vmem %s716_s27, 32 }
 0x1e0   :  { %p858_p0 = scmp.ne.s32.totalorder %s716_s27, %s857_s28  ;;  %p862_p1 = scmp.lt.s32.totalorder %s716_s27, %s716_s27 }
 0x1e1   :  { %p863_p2 = scmp.lt.s32.totalorder %s861_s29, %s857_s28 }
 0x1e3   :  { %p864_p3 = por %p863_p2, %p862_p1 }
 0x1e5   :  { %p865_p4 = pnand %p864_p3, %p858_p0 }
 0x22c   :  { %v531_v1 = vpop.xlane.xlu0 %530 }
 0x22d   :  { %v564_v28 = vadd.f32 %v1157_v31, %v531_v1 }
 0x22f   :  { %v601_v42 = vrot.slane %v564_v28, %v600_v45 }
 0x230   :  { %v533_v4 = vpop.xlane.xlu0 %532 }
 0x231   :  { %v565_v20 = vadd.f32 %v1157_v31, %v533_v4  ;;  %v682_v4 = vsub.s32 %v679_v47, %v1046_v46 }
 0x233   :  { %v606_v33 = vrot.slane %v565_v20, %v605_v15 }
 0x234   :  { %v535_v3 = vpop.xlane.xlu1 %534 }
 0x235   :  { %v566_v24 = vadd.f32 %v1157_v31, %v535_v3  ;;  %v608_v54 = vsel %vm607_vm1, %v606_v33, %v601_v42 }
 0x237   :  { %v613_v38 = vrot.slane %v566_v24, %v612_v16 }
 0x238   :  { %v537_v5 = vpop.xlane.xlu1 %536 }
 0x239   :  { %v567_v29 = vadd.f32 %v1157_v31, %v537_v5  ;;  %v615_v59 = vsel %vm614_vm2, %v613_v38, %v608_v54 }
 0x23b   :  { %v620_v43 = vrot.slane %v567_v29, %v619_v18 }
 0x23c   :  { %v539_v7 = vpop.xlane.xlu0 %538 }
 0x23d   :  { %v568_v53 = vadd.f32 %v1157_v31, %v539_v7  ;;  %v622_v0 = vsel %vm621_vm3, %v620_v43, %v615_v59 }
 0x23f   :  { %v627_v48 = vrot.slane %v568_v53, %v626_v21 }
 0x240   :  { %v541_v8 = vpop.xlane.xlu1 %540 }
 0x241   :  { %v569_v34 = vadd.f32 %v1157_v31, %v541_v8  ;;  %v629_v5 = vsel %vm628_vm4, %v627_v48, %v622_v0 }
 0x243   :  { %v634_v55 = vrot.slane %v569_v34, %v633_v25 }
 0x244   :  { %v543_v12 = vpop.xlane.xlu0 %542 }
 0x245   :  { %v570_v39 = vadd.f32 %v1157_v31, %v543_v12  ;;  %v636_v51 = vsel %vm635_vm5, %v634_v55, %v629_v5  ;;  %v700_v12 = vadd.s32 4294967176, %v1148_v6 }
 0x247   :  { %v641_v60 = vrot.slane %v570_v39, %v640_v30  ;;  %v703_v22 = vsub.s32 %v700_v12, %v1046_v46 }
 0x248   :  { %v545_v14 = vpop.xlane.xlu1 %544 }
 0x249   :  { %v571_v44 = vadd.f32 %v1157_v31, %v545_v14  ;;  %v643_v45 = vsel %vm642_vm6, %v641_v60, %v636_v51  ;;  %v696_v14 = vsub.s32 %v693_v63, %v1046_v46 }
 0x24b   :  { %v648_v1 = vrot.slane %v571_v44, %v647_v2 }
 0x24c   :  { %v547_v23 = vpop.xlane.xlu0 %546 }
 0x24d   :  { %v572_v49 = vadd.f32 %v1157_v31, %v547_v23  ;;  %v650_v16 = vsel %vm649_vm7, %v648_v1, %v643_v45 }
 0x24f   :  { %v655_v7 = vrot.slane %v572_v49, %v654_v35 }
 0x250   :  { %v549_v27 = vpop.xlane.xlu1 %548 }
 0x251   :  { %v573_v56 = vadd.f32 %v1157_v31, %v549_v27  ;;  %v657_v19 = vsel %vm656_vm8, %v655_v7, %v650_v16 }
 0x253   :  { %v662_v10 = vrot.slane %v573_v56, %v661_v40 }
 0x254   :  { %v551_v36 = vpop.xlane.xlu0 %550 }
 0x255   :  { %v574_v61 = vadd.f32 %v1157_v31, %v551_v36  ;;  %v664_v21 = vsel %vm663_vm9, %v662_v10, %v657_v19 }
 0x257   :  { %v669_v13 = vrot.slane %v574_v61, %v668_v50 }
 0x258   :  { %v553_v41 = vpop.xlane.xlu1 %552 }
 0x259   :  { %v575_v3 = vadd.f32 %v1157_v31, %v553_v41  ;;  %v671_v23 = vsel %vm670_vm10, %v669_v13, %v664_v21 }
 0x25b   :  { %v676_v17 = vrot.slane %v575_v3, %v675_v57 }
 0x25c   :  { %v555_v58 = vpop.xlane.xlu0 %554 }
 0x25d   :  { %v576_v8 = vadd.f32 %v1157_v31, %v555_v58  ;;  %v678_v26 = vsel %vm677_vm11, %v676_v17, %v671_v23 }
 0x25f   :  { %v683_v20 = vrot.slane %v576_v8, %v682_v4 }
 0x260   :  { %v557_v62 = vpop.xlane.xlu1 %556 }
 0x261   :  { %v577_v11 = vadd.f32 %v1157_v31, %v557_v62  ;;  %v685_v28 = vsel %vm684_vm12, %v683_v20, %v678_v26 }
 0x263   :  { %v690_v6 = vrot.slane %v577_v11, %v689_v9 }
 0x264   :  { %v559_v15 = vpop.xlane.xlu0 %558 }
 0x265   :  { %v578_v18 = vadd.f32 %v1157_v31, %v559_v15  ;;  %v692_v30 = vsel %vm691_vm13, %v690_v6, %v685_v28 }
 0x267   :  { %v697_v24 = vrot.slane %v578_v18, %v696_v14 }
 0x268   :  { %v561_v25 = vpop.xlane.xlu1 %560 }
 0x269   :  { %v579_v27 = vadd.f32 %v1157_v31, %v561_v25  ;;  %v699_v53 = vsel %vm698_vm14, %v697_v24, %v692_v30 }
 0x26b   :  { %v704_v29 = vrot.slane %v579_v27, %v703_v22 }
 0x26d   :  { %v706_v2 = vsel %vm705_vm15, %v704_v29, %v699_v53 }
 0x26e   :  { %708 = vst [vmem:[#allocation3] sm:$0x1] %v706_v2 }
 0x26f   :  { %868 = shalt.err (!%p865_p4)
}
 0x270   :  { %718 = dma.vmem_to_hbm [thread:$0]  %s716_s27, 16, %s1221_s7, [#allocation4]  }
 0x271   :  { %877 = dma.done.wait [#allocation4], 16  }
 0x272   :  { %878 = vsyncadd [#allocation4], 4294967280 }
 0x273   :  { %722 = vsyncpa [#allocation4], 1 }

</bundles_post_ra>
